<compile_context>
chip_gen: v7x
topology: tpu7x:2x2x1
jax: 0.10.0
libtpu: 0.0.40
codegen_flags: <defaults>
</compile_context>

<pallas_src>
import numpy as np
import jax
import jax.numpy as jnp
from jax.experimental import pallas as pl
from jax.experimental.pallas import tpu as pltpu

# ---- static configuration ----
N = 128        # batch (lives on the lane axis inside the kernel)
D = 4          # data dim (split into two halves)
H = 32         # hidden width of each coupling MLP
NUM_FLOWS = 3
HALF = D // 2
BN = 128       # batch tile (lane width) per grid step
LEAKY_SLOPE = 0.01


def _leaky_relu(x, slope=LEAKY_SLOPE):
    return jnp.where(x > 0, x, slope * x)


def nf_forward_kernel(x_ref, p1_ref, p2_ref, zs_ref, ld_ref):
    """One batch tile of the flow stack, in transposed (feature, batch) layout.

    x_ref  : (D, BN)                       input tile, batch on lanes
    p1_ref : (NUM_FLOWS, 2H, HALF+1)       [w1s.T ; w1t.T | b1s.T ; b1t.T]
    p2_ref : (NUM_FLOWS, 2*HALF, 2H+1)     [[w2s.T, 0],[0, w2t.T] | b2s.T ; b2t.T]
    zs_ref : (NUM_FLOWS+1, D, BN)
    ld_ref : (1, BN)
    """
    xT = x_ref[...]                      # (D, BN)
    x0 = xT[:HALF, :]                    # (HALF, BN) — halves carried separately
    x1 = xT[HALF:, :]
    zs_ref[0] = xT

    log_det = jnp.zeros((1, x_ref.shape[1]), jnp.float32)

    for i in range(NUM_FLOWS):           # statically unrolled
        cond = x0 if (i % 2 == 0) else x1

        p1 = p1_ref[i]                   # (2H, HALF+1)
        # first layer: K=HALF contraction as broadcast FMAs on the VPU (no MXU)
        h = p1[:, HALF:HALF + 1]         # fused bias (2H, 1)
        for k in range(HALF):
            h = h + p1[:, k:k + 1] * cond[k:k + 1, :]
        h = _leaky_relu(h)               # (2H, BN) — both nets' hidden, fused

        p2 = p2_ref[i]                   # (2*HALF, 2H+1)
        # second layer: single block-diagonal MXU matmul -> [s ; t]
        st = jnp.dot(p2[:, :2 * H], h, preferred_element_type=jnp.float32) \
             + p2[:, 2 * H:]             # (2*HALF, BN)
        s = st[:HALF, :]
        t = st[HALF:, :]

        if i % 2 == 0:
            x1 = x1 * jnp.exp(s) + t
        else:
            x0 = x0 * jnp.exp(s) + t

        log_det = log_det + jnp.sum(s, axis=0, keepdims=True)
        zs_ref[i + 1] = jnp.concatenate([x0, x1], axis=0)

    ld_ref[...] = log_det


def pack_params(params):
    """Pack the 8 per-flow parameter tensors into 2 fused, transposed slabs."""
    (w1s, b1s, w2s, b2s, w1t, b1t, w2t, b2t) = params
    # p1: (F, 2H, HALF+1)  rows 0:H = w1s.T, rows H:2H = w1t.T, last col = bias
    w1 = jnp.concatenate([jnp.transpose(w1s, (0, 2, 1)),
                          jnp.transpose(w1t, (0, 2, 1))], axis=1)
    b1 = jnp.concatenate([jnp.transpose(b1s, (0, 2, 1)),
                          jnp.transpose(b1t, (0, 2, 1))], axis=1)
    p1 = jnp.concatenate([w1, b1], axis=2)

    # p2: (F, 2*HALF, 2H+1)  block-diag [[w2s.T, 0],[0, w2t.T]] plus bias column
    z = jnp.zeros((NUM_FLOWS, HALF, H), jnp.float32)
    top = jnp.concatenate([jnp.transpose(w2s, (0, 2, 1)), z], axis=2)
    bot = jnp.concatenate([z, jnp.transpose(w2t, (0, 2, 1))], axis=2)
    b2 = jnp.concatenate([jnp.transpose(b2s, (0, 2, 1)),
                          jnp.transpose(b2t, (0, 2, 1))], axis=1)
    p2 = jnp.concatenate([jnp.concatenate([top, bot], axis=1), b2], axis=2)
    return p1, p2


@jax.jit
def normalizing_flow_forward(x, params):
    """Returns (zs, log_det) matching NormalizingFlow.forward.

    zs      : (NUM_FLOWS + 1, N, D)  -- zs[0] == x
    log_det : (N,)
    """
    n, d = x.shape
    assert d == D and n % BN == 0, "demo requires D feature dims and batch % 128 == 0"
    p1, p2 = pack_params(params)
    x_t = x.T                            # (D, N): batch goes on lanes

    zs_t, ld_t = pl.pallas_call(
        nf_forward_kernel,
        out_shape=(
            jax.ShapeDtypeStruct((NUM_FLOWS + 1, D, n), jnp.float32),
            jax.ShapeDtypeStruct((1, n), jnp.float32),
        ),
        grid=(n // BN,),
        in_specs=[
            pl.BlockSpec((D, BN), lambda b: (0, b)),
            pl.BlockSpec((NUM_FLOWS, 2 * H, HALF + 1), lambda b: (0, 0, 0)),
            pl.BlockSpec((NUM_FLOWS, 2 * HALF, 2 * H + 1), lambda b: (0, 0, 0)),
        ],
        out_specs=(
            pl.BlockSpec((NUM_FLOWS + 1, D, BN), lambda b: (0, 0, b)),
            pl.BlockSpec((1, BN), lambda b: (0, b)),
        ),
        compiler_params=pltpu.CompilerParams(
            dimension_semantics=("parallel",)),
    )(x_t, p1, p2)

    zs = jnp.transpose(zs_t, (0, 2, 1))  # back to (NUM_FLOWS+1, N, D)
    log_det = ld_t[0]                    # (N,)
    return zs, log_det


def make_params(key):
    ks = jax.random.split(key, 8)
    scale = 0.1
    w1s = scale * jax.random.normal(ks[0], (NUM_FLOWS, HALF, H), jnp.float32)
    b1s = scale * jax.random.normal(ks[1], (NUM_FLOWS, 1, H), jnp.float32)
    w2s = scale * jax.random.normal(ks[2], (NUM_FLOWS, H, HALF), jnp.float32)
    b2s = scale * jax.random.normal(ks[3], (NUM_FLOWS, 1, HALF), jnp.float32)
    w1t = scale * jax.random.normal(ks[4], (NUM_FLOWS, HALF, H), jnp.float32)
    b1t = scale * jax.random.normal(ks[5], (NUM_FLOWS, 1, H), jnp.float32)
    w2t = scale * jax.random.normal(ks[6], (NUM_FLOWS, H, HALF), jnp.float32)
    b2t = scale * jax.random.normal(ks[7], (NUM_FLOWS, 1, HALF), jnp.float32)
    return (w1s, b1s, w2s, b2s, w1t, b1t, w2t, b2t)


def reference_forward(x, params):
    """Pure-JAX reference mirroring the PyTorch NormalizingFlow.forward."""
    (w1s, b1s, w2s, b2s, w1t, b1t, w2t, b2t) = params
    zs = [x]
    log_det = jnp.zeros((x.shape[0],), jnp.float32)
    for i in range(NUM_FLOWS):
        x0, x1 = x[:, :HALF], x[:, HALF:]
        cond = x0 if i % 2 == 0 else x1
        s = _leaky_relu(cond @ w1s[i] + b1s[i]) @ w2s[i] + b2s[i]
        t = _leaky_relu(cond @ w1t[i] + b1t[i]) @ w2t[i] + b2t[i]
        if i % 2 == 0:
            x1 = x1 * jnp.exp(s) + t
        else:
            x0 = x0 * jnp.exp(s) + t
        x = jnp.concatenate([x0, x1], axis=1)
        log_det = log_det + jnp.sum(s, axis=1)
        zs.append(x)
    return jnp.stack(zs, axis=0), log_det


if __name__ == "__main__":
    key = jax.random.PRNGKey(0)
    kx, kp = jax.random.split(key)
    x = jax.random.normal(kx, (N, D), jnp.float32)
    params = make_params(kp)

    zs, log_det = normalizing_flow_forward(x, params)
    jax.block_until_ready((zs, log_det))

    zs_ref, ld_ref = reference_forward(x, params)
    assert np.allclose(np.asarray(zs), np.asarray(zs_ref), atol=1e-4, rtol=1e-4)
    assert np.allclose(np.asarray(log_det), np.asarray(ld_ref), atol=1e-4, rtol=1e-4)

    print("KERNEL_OK")
</pallas_src>

<mosaic_0001>
module attributes {stable_mosaic.version = 11 : i64} {
  func.func @nf_forward_kernel(%arg0: i32, %arg1: memref<4x128xf32, #tpu.memory_space<vmem>>, %arg2: memref<3x64x3xf32, #tpu.memory_space<vmem>>, %arg3: memref<3x4x65xf32, #tpu.memory_space<vmem>>, %arg4: memref<4x4x128xf32, #tpu.memory_space<vmem>>, %arg5: memref<1x128xf32, #tpu.memory_space<vmem>>) attributes {dimension_semantics = [#tpu.dimension_semantics<parallel>], iteration_bounds = array<i64: 1>, scalar_prefetch = 0 : i64, scratch_operands = 0 : i64, tpu.core_type = #tpu.core_type<tc>, window_params = [{transform_indices = @transform_0, window_bounds = array<i64: 4, 128>}, {pipeline_mode = #tpu.pipeline_mode<synchronous>, transform_indices = @transform_1, window_bounds = array<i64: 3, 64, 3>}, {pipeline_mode = #tpu.pipeline_mode<synchronous>, transform_indices = @transform_2, window_bounds = array<i64: 3, 4, 65>}, {transform_indices = @transform_3, window_bounds = array<i64: 4, 4, 128>}, {transform_indices = @transform_4, window_bounds = array<i64: 1, 128>}]} {
    %c0 = arith.constant 0 : index
    %c0_0 = arith.constant 0 : index
    %0 = vector.load %arg1[%c0, %c0_0] : memref<4x128xf32, #tpu.memory_space<vmem>>, vector<4x128xf32>
    %1 = vector.extract_strided_slice %0 {offsets = [0, 0], sizes = [2, 128], strides = [1, 1]} : vector<4x128xf32> to vector<2x128xf32>
    %2 = vector.extract_strided_slice %0 {offsets = [2, 0], sizes = [2, 128], strides = [1, 1]} : vector<4x128xf32> to vector<2x128xf32>
    %c0_1 = arith.constant 0 : index
    %c0_2 = arith.constant 0 : index
    %c0_3 = arith.constant 0 : index
    %3 = vector.load %arg4[%c0_1, %c0_2, %c0_3] : memref<4x4x128xf32, #tpu.memory_space<vmem>>, vector<1x4x128xf32>
    %4 = vector.shape_cast %3 : vector<1x4x128xf32> to vector<4x128xf32>
    %5 = vector.shape_cast %0 : vector<4x128xf32> to vector<1x4x128xf32>
    tpu.vector_store %arg4[%c0_1, %c0_2, %c0_3], %5 {strides = array<i32>} : memref<4x4x128xf32, #tpu.memory_space<vmem>>, vector<1x4x128xf32>,
    %cst = arith.constant 0.000000e+00 : f32
    %6 = vector.broadcast %cst : f32 to vector<1x128xf32>
    %c0_4 = arith.constant 0 : index
    %c0_5 = arith.constant 0 : index
    %c0_6 = arith.constant 0 : index
    %7 = vector.load %arg2[%c0_4, %c0_5, %c0_6] : memref<3x64x3xf32, #tpu.memory_space<vmem>>, vector<1x64x3xf32>
    %8 = vector.shape_cast %7 : vector<1x64x3xf32> to vector<64x3xf32>
    %9 = vector.extract_strided_slice %8 {offsets = [0, 2], sizes = [64, 1], strides = [1, 1]} : vector<64x3xf32> to vector<64x1xf32>
    %10 = vector.extract_strided_slice %8 {offsets = [0, 0], sizes = [64, 1], strides = [1, 1]} : vector<64x3xf32> to vector<64x1xf32>
    %11 = vector.extract_strided_slice %1 {offsets = [0, 0], sizes = [1, 128], strides = [1, 1]} : vector<2x128xf32> to vector<1x128xf32>
    %12 = vector.broadcast %10 : vector<64x1xf32> to vector<64x128xf32>
    %13 = vector.broadcast %11 : vector<1x128xf32> to vector<64x128xf32>
    %14 = arith.mulf %12, %13 : vector<64x128xf32>
    %15 = vector.broadcast %9 : vector<64x1xf32> to vector<64x128xf32>
    %16 = arith.addf %15, %14 : vector<64x128xf32>
    %17 = vector.extract_strided_slice %8 {offsets = [0, 1], sizes = [64, 1], strides = [1, 1]} : vector<64x3xf32> to vector<64x1xf32>
    %18 = vector.extract_strided_slice %1 {offsets = [1, 0], sizes = [1, 128], strides = [1, 1]} : vector<2x128xf32> to vector<1x128xf32>
    %19 = vector.broadcast %17 : vector<64x1xf32> to vector<64x128xf32>
    %20 = vector.broadcast %18 : vector<1x128xf32> to vector<64x128xf32>
    %21 = arith.mulf %19, %20 : vector<64x128xf32>
    %22 = arith.addf %16, %21 : vector<64x128xf32>
    %cst_7 = arith.constant 0.000000e+00 : f32
    %23 = vector.broadcast %cst_7 : f32 to vector<64x128xf32>
    %24 = arith.cmpf ogt, %22, %23 : vector<64x128xf32>
    %cst_8 = arith.constant 0.00999999977 : f32
    %25 = vector.broadcast %cst_8 : f32 to vector<64x128xf32>
    %26 = arith.mulf %25, %22 : vector<64x128xf32>
    %27 = arith.select %24, %22, %26 : vector<64x128xi1>, vector<64x128xf32>
    %c0_9 = arith.constant 0 : index
    %c0_10 = arith.constant 0 : index
    %c0_11 = arith.constant 0 : index
    %28 = vector.load %arg3[%c0_9, %c0_10, %c0_11] : memref<3x4x65xf32, #tpu.memory_space<vmem>>, vector<1x4x65xf32>
    %29 = vector.shape_cast %28 : vector<1x4x65xf32> to vector<4x65xf32>
    %30 = vector.extract_strided_slice %29 {offsets = [0, 0], sizes = [4, 64], strides = [1, 1]} : vector<4x65xf32> to vector<4x64xf32>
    %cst_12 = arith.constant dense<0.000000e+00> : vector<4x128xf32>
    %31 = tpu.matmul %30, %27, %cst_12 {dimension_numbers = #tpu.dot_dimension_numbers<[1], [0], [0], [1], [0, 0, 1, 1], [], []>} : vector<4x64xf32>, vector<64x128xf32>, vector<4x128xf32> -> vector<4x128xf32>
    %32 = vector.extract_strided_slice %29 {offsets = [0, 64], sizes = [4, 1], strides = [1, 1]} : vector<4x65xf32> to vector<4x1xf32>
    %33 = vector.broadcast %32 : vector<4x1xf32> to vector<4x128xf32>
    %34 = arith.addf %31, %33 : vector<4x128xf32>
    %35 = vector.extract_strided_slice %34 {offsets = [0, 0], sizes = [2, 128], strides = [1, 1]} : vector<4x128xf32> to vector<2x128xf32>
    %36 = vector.extract_strided_slice %34 {offsets = [2, 0], sizes = [2, 128], strides = [1, 1]} : vector<4x128xf32> to vector<2x128xf32>
    %37 = math.exp %35 : vector<2x128xf32>
    %38 = arith.mulf %2, %37 : vector<2x128xf32>
    %39 = arith.addf %38, %36 : vector<2x128xf32>
    %cst_13 = arith.constant dense<0.000000e+00> : vector<128xf32>
    %40 = vector.multi_reduction <add>, %35, %cst_13 [0] : vector<2x128xf32> to vector<128xf32>
    %41 = vector.shape_cast %40 : vector<128xf32> to vector<1x128xf32>
    %42 = arith.addf %6, %41 : vector<1x128xf32>
    %43 = tpu.concatenate %1, %39 in 0 : vector<2x128xf32>, vector<2x128xf32> -> vector<4x128xf32>
    %c1 = arith.constant 1 : index
    %c0_14 = arith.constant 0 : index
    %c0_15 = arith.constant 0 : index
    %44 = vector.load %arg4[%c1, %c0_14, %c0_15] : memref<4x4x128xf32, #tpu.memory_space<vmem>>, vector<1x4x128xf32>
    %45 = vector.shape_cast %44 : vector<1x4x128xf32> to vector<4x128xf32>
    %46 = vector.shape_cast %43 : vector<4x128xf32> to vector<1x4x128xf32>
    tpu.vector_store %arg4[%c1, %c0_14, %c0_15], %46 {strides = array<i32>} : memref<4x4x128xf32, #tpu.memory_space<vmem>>, vector<1x4x128xf32>,
    %c1_16 = arith.constant 1 : index
    %c0_17 = arith.constant 0 : index
    %c0_18 = arith.constant 0 : index
    %47 = vector.load %arg2[%c1_16, %c0_17, %c0_18] : memref<3x64x3xf32, #tpu.memory_space<vmem>>, vector<1x64x3xf32>
    %48 = vector.shape_cast %47 : vector<1x64x3xf32> to vector<64x3xf32>
    %49 = vector.extract_strided_slice %48 {offsets = [0, 2], sizes = [64, 1], strides = [1, 1]} : vector<64x3xf32> to vector<64x1xf32>
    %50 = vector.extract_strided_slice %48 {offsets = [0, 0], sizes = [64, 1], strides = [1, 1]} : vector<64x3xf32> to vector<64x1xf32>
    %51 = vector.extract_strided_slice %39 {offsets = [0, 0], sizes = [1, 128], strides = [1, 1]} : vector<2x128xf32> to vector<1x128xf32>
    %52 = vector.broadcast %50 : vector<64x1xf32> to vector<64x128xf32>
    %53 = vector.broadcast %51 : vector<1x128xf32> to vector<64x128xf32>
    %54 = arith.mulf %52, %53 : vector<64x128xf32>
    %55 = vector.broadcast %49 : vector<64x1xf32> to vector<64x128xf32>
    %56 = arith.addf %55, %54 : vector<64x128xf32>
    %57 = vector.extract_strided_slice %48 {offsets = [0, 1], sizes = [64, 1], strides = [1, 1]} : vector<64x3xf32> to vector<64x1xf32>
    %58 = vector.extract_strided_slice %39 {offsets = [1, 0], sizes = [1, 128], strides = [1, 1]} : vector<2x128xf32> to vector<1x128xf32>
    %59 = vector.broadcast %57 : vector<64x1xf32> to vector<64x128xf32>
    %60 = vector.broadcast %58 : vector<1x128xf32> to vector<64x128xf32>
    %61 = arith.mulf %59, %60 : vector<64x128xf32>
    %62 = arith.addf %56, %61 : vector<64x128xf32>
    %cst_19 = arith.constant 0.000000e+00 : f32
    %63 = vector.broadcast %cst_19 : f32 to vector<64x128xf32>
    %64 = arith.cmpf ogt, %62, %63 : vector<64x128xf32>
    %cst_20 = arith.constant 0.00999999977 : f32
    %65 = vector.broadcast %cst_20 : f32 to vector<64x128xf32>
    %66 = arith.mulf %65, %62 : vector<64x128xf32>
    %67 = arith.select %64, %62, %66 : vector<64x128xi1>, vector<64x128xf32>
    %c1_21 = arith.constant 1 : index
    %c0_22 = arith.constant 0 : index
    %c0_23 = arith.constant 0 : index
    %68 = vector.load %arg3[%c1_21, %c0_22, %c0_23] : memref<3x4x65xf32, #tpu.memory_space<vmem>>, vector<1x4x65xf32>
    %69 = vector.shape_cast %68 : vector<1x4x65xf32> to vector<4x65xf32>
    %70 = vector.extract_strided_slice %69 {offsets = [0, 0], sizes = [4, 64], strides = [1, 1]} : vector<4x65xf32> to vector<4x64xf32>
    %cst_24 = arith.constant dense<0.000000e+00> : vector<4x128xf32>
    %71 = tpu.matmul %70, %67, %cst_24 {dimension_numbers = #tpu.dot_dimension_numbers<[1], [0], [0], [1], [0, 0, 1, 1], [], []>} : vector<4x64xf32>, vector<64x128xf32>, vector<4x128xf32> -> vector<4x128xf32>
    %72 = vector.extract_strided_slice %69 {offsets = [0, 64], sizes = [4, 1], strides = [1, 1]} : vector<4x65xf32> to vector<4x1xf32>
    %73 = vector.broadcast %72 : vector<4x1xf32> to vector<4x128xf32>
    %74 = arith.addf %71, %73 : vector<4x128xf32>
    %75 = vector.extract_strided_slice %74 {offsets = [0, 0], sizes = [2, 128], strides = [1, 1]} : vector<4x128xf32> to vector<2x128xf32>
    %76 = vector.extract_strided_slice %74 {offsets = [2, 0], sizes = [2, 128], strides = [1, 1]} : vector<4x128xf32> to vector<2x128xf32>
    %77 = math.exp %75 : vector<2x128xf32>
    %78 = arith.mulf %1, %77 : vector<2x128xf32>
    %79 = arith.addf %78, %76 : vector<2x128xf32>
    %cst_25 = arith.constant dense<0.000000e+00> : vector<128xf32>
    %80 = vector.multi_reduction <add>, %75, %cst_25 [0] : vector<2x128xf32> to vector<128xf32>
    %81 = vector.shape_cast %80 : vector<128xf32> to vector<1x128xf32>
    %82 = arith.addf %42, %81 : vector<1x128xf32>
    %83 = tpu.concatenate %79, %39 in 0 : vector<2x128xf32>, vector<2x128xf32> -> vector<4x128xf32>
    %c2 = arith.constant 2 : index
    %c0_26 = arith.constant 0 : index
    %c0_27 = arith.constant 0 : index
    %84 = vector.load %arg4[%c2, %c0_26, %c0_27] : memref<4x4x128xf32, #tpu.memory_space<vmem>>, vector<1x4x128xf32>
    %85 = vector.shape_cast %84 : vector<1x4x128xf32> to vector<4x128xf32>
    %86 = vector.shape_cast %83 : vector<4x128xf32> to vector<1x4x128xf32>
    tpu.vector_store %arg4[%c2, %c0_26, %c0_27], %86 {strides = array<i32>} : memref<4x4x128xf32, #tpu.memory_space<vmem>>, vector<1x4x128xf32>,
    %c2_28 = arith.constant 2 : index
    %c0_29 = arith.constant 0 : index
    %c0_30 = arith.constant 0 : index
    %87 = vector.load %arg2[%c2_28, %c0_29, %c0_30] : memref<3x64x3xf32, #tpu.memory_space<vmem>>, vector<1x64x3xf32>
    %88 = vector.shape_cast %87 : vector<1x64x3xf32> to vector<64x3xf32>
    %89 = vector.extract_strided_slice %88 {offsets = [0, 2], sizes = [64, 1], strides = [1, 1]} : vector<64x3xf32> to vector<64x1xf32>
    %90 = vector.extract_strided_slice %88 {offsets = [0, 0], sizes = [64, 1], strides = [1, 1]} : vector<64x3xf32> to vector<64x1xf32>
    %91 = vector.extract_strided_slice %79 {offsets = [0, 0], sizes = [1, 128], strides = [1, 1]} : vector<2x128xf32> to vector<1x128xf32>
    %92 = vector.broadcast %90 : vector<64x1xf32> to vector<64x128xf32>
    %93 = vector.broadcast %91 : vector<1x128xf32> to vector<64x128xf32>
    %94 = arith.mulf %92, %93 : vector<64x128xf32>
    %95 = vector.broadcast %89 : vector<64x1xf32> to vector<64x128xf32>
    %96 = arith.addf %95, %94 : vector<64x128xf32>
    %97 = vector.extract_strided_slice %88 {offsets = [0, 1], sizes = [64, 1], strides = [1, 1]} : vector<64x3xf32> to vector<64x1xf32>
    %98 = vector.extract_strided_slice %79 {offsets = [1, 0], sizes = [1, 128], strides = [1, 1]} : vector<2x128xf32> to vector<1x128xf32>
    %99 = vector.broadcast %97 : vector<64x1xf32> to vector<64x128xf32>
    %100 = vector.broadcast %98 : vector<1x128xf32> to vector<64x128xf32>
    %101 = arith.mulf %99, %100 : vector<64x128xf32>
    %102 = arith.addf %96, %101 : vector<64x128xf32>
    %cst_31 = arith.constant 0.000000e+00 : f32
    %103 = vector.broadcast %cst_31 : f32 to vector<64x128xf32>
    %104 = arith.cmpf ogt, %102, %103 : vector<64x128xf32>
    %cst_32 = arith.constant 0.00999999977 : f32
    %105 = vector.broadcast %cst_32 : f32 to vector<64x128xf32>
    %106 = arith.mulf %105, %102 : vector<64x128xf32>
    %107 = arith.select %104, %102, %106 : vector<64x128xi1>, vector<64x128xf32>
    %c2_33 = arith.constant 2 : index
    %c0_34 = arith.constant 0 : index
    %c0_35 = arith.constant 0 : index
    %108 = vector.load %arg3[%c2_33, %c0_34, %c0_35] : memref<3x4x65xf32, #tpu.memory_space<vmem>>, vector<1x4x65xf32>
    %109 = vector.shape_cast %108 : vector<1x4x65xf32> to vector<4x65xf32>
    %110 = vector.extract_strided_slice %109 {offsets = [0, 0], sizes = [4, 64], strides = [1, 1]} : vector<4x65xf32> to vector<4x64xf32>
    %cst_36 = arith.constant dense<0.000000e+00> : vector<4x128xf32>
    %111 = tpu.matmul %110, %107, %cst_36 {dimension_numbers = #tpu.dot_dimension_numbers<[1], [0], [0], [1], [0, 0, 1, 1], [], []>} : vector<4x64xf32>, vector<64x128xf32>, vector<4x128xf32> -> vector<4x128xf32>
    %112 = vector.extract_strided_slice %109 {offsets = [0, 64], sizes = [4, 1], strides = [1, 1]} : vector<4x65xf32> to vector<4x1xf32>
    %113 = vector.broadcast %112 : vector<4x1xf32> to vector<4x128xf32>
    %114 = arith.addf %111, %113 : vector<4x128xf32>
    %115 = vector.extract_strided_slice %114 {offsets = [0, 0], sizes = [2, 128], strides = [1, 1]} : vector<4x128xf32> to vector<2x128xf32>
    %116 = vector.extract_strided_slice %114 {offsets = [2, 0], sizes = [2, 128], strides = [1, 1]} : vector<4x128xf32> to vector<2x128xf32>
    %117 = math.exp %115 : vector<2x128xf32>
    %118 = arith.mulf %39, %117 : vector<2x128xf32>
    %119 = arith.addf %118, %116 : vector<2x128xf32>
    %cst_37 = arith.constant dense<0.000000e+00> : vector<128xf32>
    %120 = vector.multi_reduction <add>, %115, %cst_37 [0] : vector<2x128xf32> to vector<128xf32>
    %121 = vector.shape_cast %120 : vector<128xf32> to vector<1x128xf32>
    %122 = arith.addf %82, %121 : vector<1x128xf32>
    %123 = tpu.concatenate %79, %119 in 0 : vector<2x128xf32>, vector<2x128xf32> -> vector<4x128xf32>
    %c3 = arith.constant 3 : index
    %c0_38 = arith.constant 0 : index
    %c0_39 = arith.constant 0 : index
    %124 = vector.load %arg4[%c3, %c0_38, %c0_39] : memref<4x4x128xf32, #tpu.memory_space<vmem>>, vector<1x4x128xf32>
    %125 = vector.shape_cast %124 : vector<1x4x128xf32> to vector<4x128xf32>
    %126 = vector.shape_cast %123 : vector<4x128xf32> to vector<1x4x128xf32>
    tpu.vector_store %arg4[%c3, %c0_38, %c0_39], %126 {strides = array<i32>} : memref<4x4x128xf32, #tpu.memory_space<vmem>>, vector<1x4x128xf32>,
    %c0_40 = arith.constant 0 : index
    %c0_41 = arith.constant 0 : index
    %127 = vector.load %arg5[%c0_40, %c0_41] : memref<1x128xf32, #tpu.memory_space<vmem>>, vector<1x128xf32>
    tpu.vector_store %arg5[%c0_40, %c0_41], %122 {strides = array<i32>} : memref<1x128xf32, #tpu.memory_space<vmem>>, vector<1x128xf32>,
    return
  }
  func.func @transform_0(%arg0: i32) -> (i32, i32) {
    %c0_i32 = arith.constant 0 : i32
    %c0_i32_0 = arith.constant 0 : i32
    return %c0_i32, %arg0 : i32, i32
  }
  func.func @transform_1(%arg0: i32) -> (i32, i32, i32) {
    %c0_i32 = arith.constant 0 : i32
    %c0_i32_0 = arith.constant 0 : i32
    %c0_i32_1 = arith.constant 0 : i32
    %c0_i32_2 = arith.constant 0 : i32
    return %c0_i32, %c0_i32_0, %c0_i32_1 : i32, i32, i32
  }
  func.func @transform_2(%arg0: i32) -> (i32, i32, i32) {
    %c0_i32 = arith.constant 0 : i32
    %c0_i32_0 = arith.constant 0 : i32
    %c0_i32_1 = arith.constant 0 : i32
    %c0_i32_2 = arith.constant 0 : i32
    return %c0_i32, %c0_i32_0, %c0_i32_1 : i32, i32, i32
  }
  func.func @transform_3(%arg0: i32) -> (i32, i32, i32) {
    %c0_i32 = arith.constant 0 : i32
    %c0_i32_0 = arith.constant 0 : i32
    %c0_i32_1 = arith.constant 0 : i32
    return %c0_i32, %c0_i32_0, %arg0 : i32, i32, i32
  }
  func.func @transform_4(%arg0: i32) -> (i32, i32) {
    %c0_i32 = arith.constant 0 : i32
    %c0_i32_0 = arith.constant 0 : i32
    return %c0_i32, %arg0 : i32, i32
  }
}

</mosaic_0001>

<bundles_post_ra>
// kernel: normalizing_flow_forward.1
= control target key start
LH: loop header
LB: loop body
LE: loop exit
PB: predicated region body
PF: predicated region fallthrough
CT: control target
= control target key end

     0   :  { %10 = vsyncpa [#allocation3], 0  ;;  %v1124_v1 = vmov 2   ;;  %v1125_v2 = vmov 0   ;;  %s1452_s0 = inlined_call_operand.vmem [shape: f32[4,128], index: 0, kind: input, shape index: {}]   ;;  %s1453_s1 = inlined_call_operand.vmem [shape: f32[3,64,3], index: 1, kind: input, shape index: {}]   ;;  %s1454_s2 = inlined_call_operand.vmem [shape: f32[3,4,65], index: 2, kind: input, shape index: {}]   ;;  %s1455_s3 = inlined_call_operand.hbm [shape: f32[4,4,128], index: 3, kind: output, shape index: {0}]   ;;  %s1456_s4 = inlined_call_operand.hbm [shape: f32[1,128], index: 4, kind: output, shape index: {1}]  }
   0x1   :  { %v20_v0 = vld [vmem:[%s1453_s1] sm:$0xff]  ;;  %1026 = vset.pattern.permute.xlu1 %v1124_v1  ;;  %1025 = vset.pattern.permute.xlu0 %v1125_v2  ;;  %v21_v4 = vld [vmem:[%s1453_s1 + $0x8] sm:$0xff] }
   0x2   :  { %81 = vperm.xlu1 %1026, %v20_v0   ;;  %30 = vperm.xlu0 %1025, %v20_v0   ;;  %v1168_v3 = vld [vmem:[%s1452_s0] sm:$0xf] }
   0x3   :  { %19 = vst [vmem:[#allocation2] sm:$0xf] %v1168_v3 }
   0x4   :  { %11 = vsyncpa [#allocation5], 0  ;;  %v23_v5 = vld [vmem:[%s1453_s1 + $0x18] sm:$0xff]  ;;  %v1126_v6 = vmov 1   ;;  %v25_v7 = vld [vmem:[%s1453_s1 + $0x28] sm:$0xff]  ;;  %v1127_v11 = vmov 0.0|0.0   ;;  %v68_v25 = vlaneseq }
   0x5   :  { %v22_v8 = vld [vmem:[%s1453_s1 + $0x10] sm:$0xff]  ;;  %v27_v9 = vld [vmem:[%s1453_s1 + $0x38] sm:$0xff]  ;;  %v24_v10 = vld [vmem:[%s1453_s1 + $0x20] sm:$0xff]  ;;  %978 = vmatprep.subr.bf16.mxu0 %v1127_v11  ;;  %990 = vmatprep.subr.bf16.mxu1 %v1127_v11  ;;  %vm1128_vm0 = vmmov 0   ;;  %v1129_v13 = vmov 0.0   ;;  %v1130_v16 = vmov 64  }
   0x6   :  { %85 = vperm.xlu1 %1026, %v21_v4   ;;  %35 = vperm.xlu0 %1025, %v21_v4   ;;  %v26_v12 = vld [vmem:[%s1453_s1 + $0x30] sm:$0xff]  ;;  %v874_v14 = vld [vmem:[%s1453_s1 + $0x40] sm:$0xff]  ;;  %v875_v17 = vld [vmem:[%s1453_s1 + $0x48] sm:$0xff]  ;;  %v1257_v27 = vshrl.u32 %v68_v25, 7  ;;  %vm202_vm9 = vcmask 523264   ;;  %vm282_vm10 = vcmask 1041408  }
   0x7   :  { %937 = vmatprep.mubr.msk.f32.mxu0 %vm1128_vm0, %v1129_v13  ;;  %956 = vmatprep.mubr.msk.f32.mxu1 %vm1128_vm0, %v1129_v13  ;;  %v1216_v15 = vld [vmem:[%s1454_s2] sm:$0xf]  ;;  %v876_v18 = vld [vmem:[%s1453_s1 + $0x50] sm:$0xff]  ;;  %v877_v21 = vld [vmem:[%s1453_s1 + $0x58] sm:$0xff]  ;;  %s1132_s17 = smov [#allocation2]  }
   0x8   :  { %v878_v19 = vld [vmem:[%s1453_s1 + $0x60] sm:$0xff]  ;;  %v1233_v20 = vld [vmem:[%s1453_s1 + $0x70] sm:$0xff]  ;;  %v879_v22 = vld [vmem:[%s1453_s1 + $0x68] sm:$0xff]  ;;  %v70_v30 = vsub.s32 0, %v1257_v27  ;;  %v154_v31 = vsub.s32 1, %v1257_v27  ;;  %s848_s18 = sshll.u32 %s1132_s17, 4  ;;  %s849_s18 = int_to_ptr.vmem [resolvable:$true] %s848_s18 }
   0x9   :  { %v1249_v23 = vld [vmem:[%s1453_s1 + $0x78] sm:$0xff] }
   0xa   :  { %1027 = vset.pattern.permute.xlu1 %v1126_v6  ;;  %45 = vperm.xlu0 %1025, %v23_v5   ;;  %v1265_v34 = vrot.slane %v1168_v3, %v70_v30  ;;  %v1270_v35 = vrot.slane %v1168_v3, %v154_v31 }
   0xb   :  { %125 = vperm.xlu1 %1027, %v21_v4  }
   0xe   :  { %55 = vperm.xlu0 %1025, %v25_v7  }
   0xf   :  { %1028 = vset.pattern.permute.xlu1 %v1125_v2 }
  0x10   :  { %40 = vperm.xlu1 %1028, %v22_v8  }
  0x12   :  { %65 = vperm.xlu0 %1025, %v27_v9  }
  0x14   :  { %1029 = vset.pattern.permute.xlu1 %v1124_v1 }
  0x15   :  { %89 = vperm.xlu1 %1029, %v22_v8  }
  0x16   :  { %1035 = vset.pattern.permute.xlu0 %v1126_v6 }
  0x17   :  { %121 = vperm.xlu0 %1035, %v20_v0  }
  0x19   :  { %93 = vperm.xlu1 %1029, %v23_v5  }
  0x1b   :  { %129 = vperm.xlu0 %1035, %v22_v8  }
  0x1d   :  { %1030 = vset.pattern.permute.xlu1 %v1126_v6 }
  0x1e   :  { %133 = vperm.xlu1 %1030, %v23_v5  }
  0x1f   :  { %137 = vperm.xlu0 %1035, %v24_v10  }
  0x22   :  { %1031 = vset.pattern.permute.xlu1 %v1125_v2 }
  0x23   :  { %50 = vperm.xlu1 %1031, %v24_v10   ;;  %145 = vperm.xlu0 %1035, %v26_v12  }
  0x27   :  { %1032 = vset.pattern.permute.xlu1 %v1124_v1  ;;  %1039 = vset.pattern.permute.xlu0 %v1125_v2 }
  0x28   :  { %97 = vperm.xlu1 %1032, %v24_v10   ;;  %305 = vperm.xlu0 %1039, %v874_v14  }
  0x2c   :  { %101 = vperm.xlu1 %1032, %v25_v7   ;;  %315 = vperm.xlu0 %1039, %v876_v18  }
  0x30   :  { %1033 = vset.pattern.permute.xlu1 %v1126_v6  ;;  %325 = vperm.xlu0 %1039, %v878_v19  }
  0x31   :  { %141 = vperm.xlu1 %1033, %v25_v7  }
  0x34   :  { %335 = vperm.xlu0 %1039, %v1233_v20  }
  0x35   :  { %1034 = vset.pattern.permute.xlu1 %v1125_v2 }
  0x36   :  { %60 = vperm.xlu1 %1034, %v26_v12  }
  0x38   :  { %1049 = vset.pattern.permute.xlu0 %v1124_v1 }
  0x39   :  { %360 = vperm.xlu0 %1049, %v875_v17  }
  0x3a   :  { %1036 = vset.pattern.permute.xlu1 %v1124_v1 }
  0x3b   :  { %105 = vperm.xlu1 %1036, %v26_v12  }
  0x3d   :  { %368 = vperm.xlu0 %1049, %v877_v21  }
  0x3f   :  { %109 = vperm.xlu1 %1036, %v27_v9  }
  0x41   :  { %376 = vperm.xlu0 %1049, %v879_v22  }
  0x43   :  { %1037 = vset.pattern.permute.xlu1 %v1126_v6 }
  0x44   :  { %149 = vperm.xlu1 %1037, %v27_v9  }
  0x45   :  { %384 = vperm.xlu0 %1049, %v1249_v23  }
  0x48   :  { %1038 = vset.pattern.permute.xlu1 %v1130_v16 }
  0x49   :  { %199 = vperm.xlu1 %1038, %v1216_v15   ;;  %1053 = vset.pattern.permute.xlu0 %v1130_v16 }
  0x4d   :  { %1040 = vset.pattern.permute.xlu1 %v1125_v2 }
  0x4e   :  { %310 = vperm.xlu1 %1040, %v875_v17  }
  0x52   :  { %1041 = vset.pattern.permute.xlu1 %v1124_v1 }
  0x53   :  { %356 = vperm.xlu1 %1041, %v874_v14  }
  0x57   :  { %1042 = vset.pattern.permute.xlu1 %v1126_v6 }
  0x58   :  { %396 = vperm.xlu1 %1042, %v874_v14  }
  0x5c   :  { %400 = vperm.xlu1 %1042, %v875_v17  }
  0x60   :  { %1043 = vset.pattern.permute.xlu1 %v1125_v2 }
  0x61   :  { %320 = vperm.xlu1 %1043, %v877_v21  }
  0x65   :  { %1044 = vset.pattern.permute.xlu1 %v1124_v1 }
  0x66   :  { %364 = vperm.xlu1 %1044, %v876_v18  }
  0x6a   :  { %1045 = vset.pattern.permute.xlu1 %v1126_v6 }
  0x6b   :  { %404 = vperm.xlu1 %1045, %v876_v18  }
  0x6f   :  { %408 = vperm.xlu1 %1045, %v877_v21  }
  0x73   :  { %1046 = vset.pattern.permute.xlu1 %v1125_v2 }
  0x74   :  { %330 = vperm.xlu1 %1046, %v879_v22  }
  0x78   :  { %1047 = vset.pattern.permute.xlu1 %v1124_v1 }
  0x79   :  { %372 = vperm.xlu1 %1047, %v878_v19  }
  0x7d   :  { %1048 = vset.pattern.permute.xlu1 %v1126_v6 }
  0x7e   :  { %412 = vperm.xlu1 %1048, %v878_v19  }
  0x81   :  { %v82_v24 = vpop.permute.xlu1 %81  ;;  %v31_v26 = vpop.permute.xlu0 %30 }
  0x82   :  { %416 = vperm.xlu1 %1048, %v879_v22   ;;  %v72_v41 = vmul.f32 %v1265_v34, %v31_v26 }
  0x84   :  { %v112_v46 = vadd.f32 %v82_v24, %v72_v41 }
  0x85   :  { %v86_v28 = vpop.permute.xlu1 %85  ;;  %v36_v29 = vpop.permute.xlu0 %35 }
  0x86   :  { %v73_v37 = vmul.f32 %v1265_v34, %v36_v29  ;;  %1050 = vset.pattern.permute.xlu1 %v1125_v2 }
  0x87   :  { %340 = vperm.xlu1 %1050, %v1249_v23  }
  0x88   :  { %v113_v42 = vadd.f32 %v86_v28, %v73_v37 }
  0x89   :  { %v46_v32 = vpop.permute.xlu0 %45 }
  0x8a   :  { %v126_v33 = vpop.permute.xlu1 %125  ;;  %v75_v52 = vmul.f32 %v1265_v34, %v46_v32 }
  0x8b   :  { %v157_v39 = vmul.f32 %v1270_v35, %v126_v33  ;;  %1051 = vset.pattern.permute.xlu1 %v1124_v1 }
  0x8c   :  { %380 = vperm.xlu1 %1051, %v1233_v20  }
  0x8d   :  { %v56_v36 = vpop.permute.xlu0 %55  ;;  %v165_v44 = vadd.f32 %v157_v39, %v113_v42 }
  0x8e   :  { %v77_v21 = vmul.f32 %v1265_v34, %v56_v36 }
  0x8f   :  { %v41_v38 = vpop.permute.xlu1 %40  ;;  %v181_v51 = vmul.f32 0.01, %v165_v44  ;;  %vm173_vm1 = vcmp.gt.f32.partialorder %v165_v44, 0.0 }
  0x90   :  { %v74_v49 = vmul.f32 %v1265_v34, %v41_v38  ;;  %1052 = vset.pattern.permute.xlu1 %v1126_v6 }
  0x91   :  { %v1276_v40 = vpop.permute.xlu0 %65  ;;  %420 = vperm.xlu1 %1052, %v1233_v20   ;;  %v189_v60 = vsel %vm173_vm1, %v165_v44, %v181_v51 }
  0x94   :  { %v90_v43 = vpop.permute.xlu1 %89 }
  0x95   :  { %v114_v54 = vadd.f32 %v90_v43, %v74_v49  ;;  %424 = vperm.xlu1 %1052, %v1249_v23  }
  0x96   :  { %v122_v45 = vpop.permute.xlu0 %121 }
  0x97   :  { %v156_v47 = vmul.f32 %v1270_v35, %v122_v45  ;;  %v79_v45 = vmul.f32 %v1265_v34, %v1276_v40  ;;  %v885_v40 = vld [vmem:[%s1453_s1 + $0x88] sm:$0xff] }
  0x98   :  { %v94_v48 = vpop.permute.xlu1 %93 }
  0x99   :  { %v164_v50 = vadd.f32 %v156_v47, %v112_v46  ;;  %v115_v61 = vadd.f32 %v94_v48, %v75_v52  ;;  %1054 = vset.pattern.permute.xlu1 %v1125_v2 }
  0x9a   :  { %v130_v53 = vpop.permute.xlu0 %129 }
  0x9b   :  { %v158_v55 = vmul.f32 %v1270_v35, %v130_v53  ;;  %vm172_vm2 = vcmp.gt.f32.partialorder %v164_v50, 0.0  ;;  %v180_v56 = vmul.f32 0.01, %v164_v50 }
  0x9d   :  { %v166_v57 = vadd.f32 %v158_v55, %v114_v54  ;;  %v134_v58 = vpop.permute.xlu1 %133  ;;  %v188_v59 = vsel %vm172_vm2, %v164_v50, %v180_v56  ;;  %v888_v56 = vld [vmem:[%s1453_s1 + $0xa0] sm:$0xff] }
  0x9e   :  { %v159_v62 = vmul.f32 %v1270_v35, %v134_v58  ;;  %v979_v63 = vpack.c.bf16 %v189_v60, %v188_v59  ;;  %v138_v14 = vpop.permute.xlu0 %137  ;;  %v887_v59 = vld [vmem:[%s1453_s1 + $0x98] sm:$0xff] }
  0x9f   :  { %v182_v0 = vmul.f32 0.01, %v166_v57  ;;  %vm174_vm3 = vcmp.gt.f32.partialorder %v166_v57, 0.0  ;;  %v160_v19 = vmul.f32 %v1270_v35, %v138_v14 }
  0xa0   :  { %v167_v4 = vadd.f32 %v159_v62, %v115_v61  ;;  %980 = vmatpush3.bf16.msra.mxu0 %v979_v63  ;;  %v889_v61 = vld [vmem:[%s1453_s1 + $0xa8] sm:$0xff]  ;;  %v891_v63 = vld [vmem:[%s1453_s1 + $0xb8] sm:$0xff] }
  0xa1   :  { %981 = vmatprep.subr.bf16.mxu0 %v1127_v11  ;;  %v190_v8 = vsel %vm174_vm3, %v166_v57, %v182_v0  ;;  %v890_v57 = vld [vmem:[%s1453_s1 + $0xb0] sm:$0xff] }
  0xa2   :  { %vm175_vm4 = vcmp.gt.f32.partialorder %v167_v4, 0.0  ;;  %v183_v5 = vmul.f32 0.01, %v167_v4  ;;  %v51_v7 = vpop.permute.xlu1 %50  ;;  %v146_v41 = vpop.permute.xlu0 %145 }
  0xa3   :  { %v76_v17 = vmul.f32 %v1265_v34, %v51_v7  ;;  %v162_v44 = vmul.f32 %v1270_v35, %v146_v41 }
  0xa4   :  { %v191_v9 = vsel %vm175_vm4, %v167_v4, %v183_v5 }
  0xa5   :  { %v982_v10 = vpack.c.bf16 %v191_v9, %v190_v8 }
  0xa7   :  { %v98_v12 = vpop.permute.xlu1 %97  ;;  %983 = vmatpush3.bf16.msra.mxu0 %v982_v10  ;;  %v306_v9 = vpop.permute.xlu0 %305 }
  0xa8   :  { %984 = vmatprep.subr.bf16.mxu0 %v1127_v11  ;;  %v116_v18 = vadd.f32 %v98_v12, %v76_v17 }
  0xaa   :  { %v168_v22 = vadd.f32 %v160_v19, %v116_v18 }
  0xab   :  { %v102_v20 = vpop.permute.xlu1 %101  ;;  %v316_v12 = vpop.permute.xlu0 %315 }
  0xac   :  { %v117_v24 = vadd.f32 %v102_v20, %v77_v21  ;;  %v184_v26 = vmul.f32 0.01, %v168_v22  ;;  %vm176_vm5 = vcmp.gt.f32.partialorder %v168_v22, 0.0 }
  0xae   :  { %v192_v33 = vsel %vm176_vm5, %v168_v22, %v184_v26 }
  0xaf   :  { %v326_v20 = vpop.permute.xlu0 %325 }
  0xb0   :  { %v142_v23 = vpop.permute.xlu1 %141 }
  0xb1   :  { %v161_v25 = vmul.f32 %v1270_v35, %v142_v23 }
  0xb3   :  { %v169_v28 = vadd.f32 %v161_v25, %v117_v24  ;;  %v336_v22 = vpop.permute.xlu0 %335 }
  0xb5   :  { %vm177_vm6 = vcmp.gt.f32.partialorder %v169_v28, 0.0  ;;  %v185_v29 = vmul.f32 0.01, %v169_v28  ;;  %v61_v32 = vpop.permute.xlu1 %60 }
  0xb6   :  { %v78_v36 = vmul.f32 %v1265_v34, %v61_v32  ;;  %v1310_v34 = vld [vmem:[%s1454_s2 + $0x4] sm:$0xf] }
  0xb7   :  { %v193_v37 = vsel %vm177_vm6, %v169_v28, %v185_v29  ;;  %475 = vperm.xlu0 %1053, %v1310_v34   ;;  %v345_v28 = vsub.s32 2, %v1257_v27  ;;  %v429_v29 = vsub.s32 3, %v1257_v27 }
  0xb8   :  { %v985_v38 = vpack.c.bf16 %v193_v37, %v192_v33 }
  0xba   :  { %v106_v39 = vpop.permute.xlu1 %105  ;;  %986 = vmatpush3.bf16.msra.mxu0 %v985_v38 }
  0xbb   :  { %987 = vmatprep.subr.bf16.mxu0 %v1127_v11  ;;  %v118_v42 = vadd.f32 %v106_v39, %v78_v36  ;;  %1055 = vset.pattern.permute.xlu0 %v1124_v1 }
  0xbd   :  { %v170_v46 = vadd.f32 %v162_v44, %v118_v42 }
  0xbe   :  { %v110_v43 = vpop.permute.xlu1 %109 }
  0xbf   :  { %v119_v48 = vadd.f32 %v110_v43, %v79_v45  ;;  %v186_v50 = vmul.f32 0.01, %v170_v46  ;;  %vm178_vm7 = vcmp.gt.f32.partialorder %v170_v46, 0.0 }
  0xc1   :  { %v194_v53 = vsel %vm178_vm7, %v170_v46, %v186_v50 }
  0xc3   :  { %v150_v47 = vpop.permute.xlu1 %149 }
  0xc4   :  { %v163_v49 = vmul.f32 %v1270_v35, %v150_v47  ;;  %v884_v35 = vld [vmem:[%s1453_s1 + $0x80] sm:$0xff] }
  0xc5   :  { %579 = vperm.xlu1 %1054, %v884_v35   ;;  %630 = vperm.xlu0 %1055, %v884_v35  }
  0xc6   :  { %v171_v51 = vadd.f32 %v163_v49, %v119_v48 }
  0xc8   :  { %vm179_vm8 = vcmp.gt.f32.partialorder %v171_v51, 0.0  ;;  %v187_v52 = vmul.f32 0.01, %v171_v51 }
  0xc9   :  { %584 = vperm.xlu1 %1054, %v885_v40  }
  0xca   :  { %v195_v54 = vsel %vm179_vm8, %v171_v51, %v187_v52 }
  0xcb   :  { %v988_v55 = vpack.c.bf16 %v195_v54, %v194_v53 }
  0xcd   :  { %989 = vmatpush3.bf16.msra.mxu0 %v988_v55  ;;  %1056 = vset.pattern.permute.xlu1 %v1124_v1 }
  0xce   :  { %1002 = vmatprep.subr.bf16.mxu0 %v1127_v11  ;;  %634 = vperm.xlu1 %1056, %v885_v40  }
  0xd0   :  { %938 = vmatmul.mubr.msk.f32.vlgmr.msra.gmra.mrb[0].mxu0 %vm202_vm9, %v1216_v15  ;;  %v200_v15 = vpop.permute.xlu1 %199 }
  0xd1   :  { %975 = vmatprep.mubr.msk.f32.mxu0 %vm1128_vm0, %v1129_v13  ;;  %v886_v13 = vld [vmem:[%s1453_s1 + $0x90] sm:$0xff] }
  0xd2   :  { %638 = vperm.xlu0 %1055, %v886_v13   ;;  %1057 = vset.pattern.permute.xlu1 %v1126_v6 }
  0xd3   :  { %670 = vperm.xlu1 %1057, %v884_v35  }
  0xd4   :  { %v1331_v58 = vpop.permute.xlu1 %310 }
  0xd6   :  { %646 = vperm.xlu0 %1055, %v888_v56  }
  0xd7   :  { %1058 = vset.pattern.permute.xlu1 %v1125_v2 }
  0xd8   :  { %589 = vperm.xlu1 %1058, %v886_v13   ;;  %v1338_v60 = vpop.permute.xlu1 %356 }
  0xda   :  { %654 = vperm.xlu0 %1055, %v890_v57  }
  0xdc   :  { %594 = vperm.xlu1 %1058, %v887_v59   ;;  %v1343_v62 = vpop.permute.xlu1 %396 }
  0xde   :  { %1065 = vset.pattern.permute.xlu0 %v1126_v6 }
  0xdf   :  { %674 = vperm.xlu0 %1065, %v885_v40  }
  0xe0   :  { %1059 = vset.pattern.permute.xlu1 %v1124_v1  ;;  %v401_v0 = vpop.permute.xlu1 %400 }
  0xe1   :  { %642 = vperm.xlu1 %1059, %v887_v59  }
  0xe3   :  { %682 = vperm.xlu0 %1065, %v887_v59  }
  0xe4   :  { %v321_v4 = vpop.permute.xlu1 %320 }
  0xe5   :  { %1060 = vset.pattern.permute.xlu1 %v1126_v6 }
  0xe6   :  { %678 = vperm.xlu1 %1060, %v886_v13  }
  0xe7   :  { %690 = vperm.xlu0 %1065, %v889_v61  }
  0xe8   :  { %v1352_v5 = vpop.permute.xlu1 %364 }
  0xea   :  { %1061 = vset.pattern.permute.xlu1 %v1125_v2 }
  0xeb   :  { %698 = vperm.xlu0 %1065, %v891_v63   ;;  %599 = vperm.xlu1 %1061, %v888_v56  }
  0xec   :  { %v1355_v7 = vpop.permute.xlu1 %404 }
  0xef   :  { %1069 = vset.pattern.permute.xlu0 %v1130_v16  ;;  %604 = vperm.xlu1 %1061, %v889_v61  }
  0xf0   :  { %v409_v8 = vpop.permute.xlu1 %408 }
  0xf3   :  { %1062 = vset.pattern.permute.xlu1 %v1124_v1 }
  0xf4   :  { %650 = vperm.xlu1 %1062, %v889_v61   ;;  %v331_v10 = vpop.permute.xlu1 %330 }
  0xf8   :  { %1063 = vset.pattern.permute.xlu1 %v1126_v6  ;;  %v373_v14 = vpop.permute.xlu1 %372 }
  0xf9   :  { %686 = vperm.xlu1 %1063, %v888_v56  }
  0xfd   :  { %1064 = vset.pattern.permute.xlu1 %v1125_v2  ;;  %v413_v21 = vpop.permute.xlu1 %412 }
  0xfe   :  { %609 = vperm.xlu1 %1064, %v890_v57  }
 0x101   :  { %v417_v23 = vpop.permute.xlu1 %416 }
 0x102   :  { %614 = vperm.xlu1 %1064, %v891_v63  }
 0x106   :  { %1066 = vset.pattern.permute.xlu1 %v1124_v1  ;;  %v361_v1 = vpop.permute.xlu0 %360  ;;  %v341_v25 = vpop.permute.xlu1 %340 }
 0x107   :  { %658 = vperm.xlu1 %1066, %v891_v63  }
 0x10a   :  { %v369_v32 = vpop.permute.xlu0 %368 }
 0x10b   :  { %1067 = vset.pattern.permute.xlu1 %v1126_v6  ;;  %v381_v37 = vpop.permute.xlu1 %380 }
 0x10c   :  { %694 = vperm.xlu1 %1067, %v890_v57  }
 0x10e   :  { %v377_v43 = vpop.permute.xlu0 %376 }
 0x110   :  { %1068 = vset.pattern.permute.xlu1 %v1130_v16  ;;  %v421_v47 = vpop.permute.xlu1 %420 }
 0x112   :  { %v385_v13 = vpop.permute.xlu0 %384 }
 0x114   :  { %v425_v63 = vpop.permute.xlu1 %424 }
 0x1a3   :  { %v271_v17 = vpop.f32.mrb[0].mxu0 }
 0x1a4   :  { %v1361_v18 = vadd.f32 %v271_v17, %v200_v15  ;;  %v939_v19 = vpop.f32.mrb[1].mxu0 }
 0x1a6   :  { %v275_v2 = vmul.f32 1.442695, %v1361_v18 }
 0x1a8   :  { %1070 = vpow2.f32 %v275_v2 }
 0x1b2   :  { %v1071_v24 = vpop.eup %1070 }
 0x1b3   :  { %v278_v26 = vrot.slane %v1071_v24, 6 }
 0x1b5   :  { %v280_v6 = vmul.f32 %v278_v26, %v1168_v3 }
 0x1b7   :  { %v1369_v33 = vadd.f32 %v280_v6, %v1361_v18 }
 0x1b9   :  { %v346_v16 = vrot.slane %v1369_v33, %v345_v28  ;;  %v291_v38 = vsel %vm282_vm10, %v1168_v3, %v1369_v33  ;;  %v430_v39 = vrot.slane %v1369_v33, %v429_v29 }
 0x1ba   :  { %293 = vst [vmem:[#allocation2 + $0x4] sm:$0xf] %v291_v38 }
 0x1bb   :  { %v351_v36 = vmul.f32 %v346_v16, %v326_v20  ;;  %v348_v41 = vmul.f32 %v346_v16, %v1331_v58  ;;  %v350_v42 = vmul.f32 %v346_v16, %v321_v4  ;;  %v432_v45 = vmul.f32 %v430_v39, %v401_v0 }
 0x1bc   :  { %v352_v48 = vmul.f32 %v346_v16, %v331_v10  ;;  %v434_v49 = vmul.f32 %v430_v39, %v409_v8  ;;  %v347_v50 = vmul.f32 %v346_v16, %v306_v9  ;;  %v353_v52 = vmul.f32 %v346_v16, %v336_v22 }
 0x1bd   :  { %v388_v44 = vadd.f32 %v361_v1, %v348_v41  ;;  %v390_v46 = vadd.f32 %v369_v32, %v350_v42  ;;  %v391_v51 = vadd.f32 %v373_v14, %v351_v36  ;;  %v354_v54 = vmul.f32 %v346_v16, %v341_v25  ;;  %v1389_v36 = vld [vmem:[%s1454_s2 + $0x8] sm:$0xf]  ;;  %v580_v41 = vpop.permute.xlu1 %579  ;;  %s1131_s2 = smov [#allocation4]  }
 0x1be   :  { %v392_v35 = vadd.f32 %v377_v43, %v352_v48  ;;  %v435_v40 = vmul.f32 %v430_v39, %v413_v21  ;;  %v387_v15 = vadd.f32 %v1338_v60, %v347_v50  ;;  %v431_v56 = vmul.f32 %v430_v39, %v1343_v62  ;;  %749 = vperm.xlu1 %1068, %v1389_v36   ;;  %s861_s16 = sshll.u32 %s1131_s2, 4  ;;  %s862_s16 = int_to_ptr.vmem [resolvable:$true] %s861_s16 }
 0x1bf   :  { %v440_v53 = vadd.f32 %v432_v45, %v388_v44  ;;  %v442_v55 = vadd.f32 %v434_v49, %v390_v46  ;;  %v436_v57 = vmul.f32 %v430_v39, %v417_v23  ;;  %v393_v61 = vadd.f32 %v381_v37, %v353_v52  ;;  %v476_v49 = vpop.permute.xlu0 %475  ;;  %s1076_s19 = scalar_lea.vmem %s862_s16, 16  ;;  %s1080_s20 = scalar_lea.vmem %s862_s16, 32 }
 0x1c0   :  { %v443_v59 = vadd.f32 %v435_v40, %v391_v51  ;;  %v439_v0 = vadd.f32 %v431_v56, %v387_v15  ;;  %v349_v4 = vmul.f32 %v346_v16, %v316_v12  ;;  %v394_v10 = vadd.f32 %v385_v13, %v354_v54  ;;  %p1077_p0 = scmp.ne.s32.totalorder %s862_s16, %s1076_s19  ;;  %p1081_p1 = scmp.lt.s32.totalorder %s862_s16, %s862_s16 }
 0x1c1   :  { %vm448_vm11 = vcmp.gt.f32.partialorder %v440_v53, 0.0  ;;  %v456_v58 = vmul.f32 0.01, %v440_v53  ;;  %v458_v8 = vmul.f32 0.01, %v442_v55  ;;  %v444_v9 = vadd.f32 %v436_v57, %v392_v35  ;;  %v585_v42 = vpop.permute.xlu1 %584  ;;  %p1082_p2 = scmp.lt.s32.totalorder %s1080_s20, %s1076_s19 }
 0x1c2   :  { %vm447_vm12 = vcmp.gt.f32.partialorder %v439_v0, 0.0  ;;  %v455_v17 = vmul.f32 0.01, %v439_v0  ;;  %v389_v19 = vadd.f32 %v1352_v5, %v349_v4  ;;  %v433_v60 = vmul.f32 %v430_v39, %v1355_v7 }
 0x1c3   :  { %v464_v14 = vsel %vm448_vm11, %v440_v53, %v456_v58  ;;  %vm450_vm13 = vcmp.gt.f32.partialorder %v442_v55, 0.0  ;;  %v437_v62 = vmul.f32 %v430_v39, %v421_v47  ;;  %v438_v20 = vmul.f32 %v430_v39, %v425_v63  ;;  %v631_v51 = vpop.permute.xlu0 %630  ;;  %p1083_p3 = por %p1082_p2, %p1081_p1 }
 0x1c4   :  { %v463_v2 = vsel %vm447_vm12, %v439_v0, %v455_v17  ;;  %v441_v21 = vadd.f32 %v433_v60, %v389_v19  ;;  %v459_v22 = vmul.f32 0.01, %v443_v59  ;;  %v460_v12 = vmul.f32 0.01, %v444_v9 }
 0x1c5   :  { %v445_v23 = vadd.f32 %v437_v62, %v393_v61  ;;  %v446_v1 = vadd.f32 %v438_v20, %v394_v10  ;;  %v991_v24 = vpack.c.bf16 %v464_v14, %v463_v2  ;;  %v466_v26 = vsel %vm450_vm13, %v442_v55, %v458_v8  ;;  %v635_v43 = vpop.permute.xlu1 %634  ;;  %p1084_p4 = pnand %p1083_p3, %p1077_p0 }
 0x1c6   :  { %vm449_vm14 = vcmp.gt.f32.partialorder %v441_v21, 0.0  ;;  %v457_v25 = vmul.f32 0.01, %v441_v21  ;;  %vm452_vm15 = vcmp.gt.f32.partialorder %v444_v9, 0.0  ;;  %vm451_vm0 = vcmp.gt.f32.partialorder %v443_v59, 0.0 }
 0x1c7   :  { %992 = vmatpush3.bf16.msra.mxu1 %v991_v24  ;;  %v461_v6 = vmul.f32 0.01, %v445_v23  ;;  %v462_v28 = vmul.f32 0.01, %v446_v1  ;;  %v467_v29 = vsel %vm451_vm0, %v443_v59, %v459_v22  ;;  %v468_v32 = vsel %vm452_vm15, %v444_v9, %v460_v12  ;;  %v639_v55 = vpop.permute.xlu0 %638 }
 0x1c8   :  { %993 = vmatprep.subr.bf16.mxu1 %v1127_v11  ;;  %v465_v5 = vsel %vm449_vm14, %v441_v21, %v457_v25  ;;  %vm453_vm1 = vcmp.gt.f32.partialorder %v445_v23, 0.0  ;;  %vm454_vm2 = vcmp.gt.f32.partialorder %v446_v1, 0.0  ;;  %v997_v37 = vpack.c.bf16 %v468_v32, %v467_v29 }
 0x1c9   :  { %v994_v7 = vpack.c.bf16 %v466_v26, %v465_v5  ;;  %v469_v16 = vsel %vm453_vm1, %v445_v23, %v461_v6  ;;  %v470_v38 = vsel %vm454_vm2, %v446_v1, %v462_v28  ;;  %v1392_v44 = vpop.permute.xlu1 %670 }
 0x1ca   :  { %v1000_v39 = vpack.c.bf16 %v470_v38, %v469_v16 }
 0x1cb   :  { %995 = vmatpush3.bf16.msra.mxu1 %v994_v7  ;;  %v647_v61 = vpop.permute.xlu0 %646 }
 0x1cc   :  { %996 = vmatprep.subr.bf16.mxu1 %v1127_v11 }
 0x1cd   :  { %v1394_v45 = vpop.permute.xlu1 %589 }
 0x1cf   :  { %998 = vmatpush3.bf16.msra.mxu1 %v997_v37  ;;  %v655_v10 = vpop.permute.xlu0 %654 }
 0x1d0   :  { %999 = vmatprep.subr.bf16.mxu1 %v1127_v11 }
 0x1d1   :  { %v595_v46 = vpop.permute.xlu1 %594 }
 0x1d3   :  { %1001 = vmatpush3.bf16.msra.mxu1 %v1000_v39  ;;  %v675_v22 = vpop.permute.xlu0 %674 }
 0x1d5   :  { %v643_v47 = vpop.permute.xlu1 %642 }
 0x1d6   :  { %957 = vmatmul.mubr.msk.f32.vlgmr.msra.gmra.mrb[0].mxu1 %vm202_vm9, %v1310_v34  ;;  %v283_v34 = vsel %vm282_vm10, %v1361_v18, 0.0 }
 0x1d7   :  { %v284_v52 = vrot.slane %v283_v34, 4  ;;  %v683_v26 = vpop.permute.xlu0 %682 }
 0x1d9   :  { %v1396_v48 = vpop.permute.xlu1 %678  ;;  %v285_v53 = vadd.f32 %v284_v52, %v283_v34 }
 0x1db   :  { %v286_v15 = vrot.slane %v285_v53, 2  ;;  %v691_v39 = vpop.permute.xlu0 %690 }
 0x1dd   :  { %v600_v50 = vpop.permute.xlu1 %599  ;;  %v287_v63 = vadd.f32 %v286_v15, %v285_v53 }
 0x1df   :  { %v288_v9 = vrot.slane %v287_v63, 1 }
 0x1e1   :  { %v605_v54 = vpop.permute.xlu1 %604  ;;  %v289_v17 = vadd.f32 %v288_v9, %v287_v63 }
 0x1e5   :  { %v651_v59 = vpop.permute.xlu1 %650 }
 0x1e9   :  { %v687_v8 = vpop.permute.xlu1 %686 }
 0x1ed   :  { %v610_v2 = vpop.permute.xlu1 %609 }
 0x1f1   :  { %v615_v12 = vpop.permute.xlu1 %614 }
 0x2a9   :  { %v546_v35 = vpop.f32.mrb[0].mxu1 }
 0x2aa   :  { %v547_v40 = vadd.f32 %v546_v35, %v476_v49  ;;  %v958_v13 = vpop.f32.mrb[1].mxu1 }
 0x2ac   :  { %v550_v56 = vmul.f32 1.442695, %v547_v40  ;;  %v557_v57 = vsel %vm282_vm10, %v547_v40, 0.0  ;;  %v554_v20 = vrot.slane %v547_v40, 2 }
 0x2ad   :  { %v558_v58 = vrot.slane %v557_v57, 4 }
 0x2ae   :  { %1072 = vpow2.f32 %v550_v56 }
 0x2af   :  { %v559_v0 = vadd.f32 %v558_v58, %v557_v57 }
 0x2b1   :  { %v560_v18 = vrot.slane %v559_v0, 2 }
 0x2b3   :  { %v561_v4 = vadd.f32 %v560_v18, %v559_v0 }
 0x2b5   :  { %v562_v14 = vrot.slane %v561_v4, 1 }
 0x2b7   :  { %v563_v19 = vadd.f32 %v562_v14, %v561_v4 }
 0x2b8   :  { %v1073_v60 = vpop.eup %1072 }
 0x2b9   :  { %v552_v62 = vmul.f32 %v1073_v60, %v1168_v3  ;;  %v1402_v21 = vadd.f32 %v563_v19, %v289_v17 }
 0x2bb   :  { %v1404_v23 = vadd.f32 %v554_v20, %v552_v62 }
 0x2bd   :  { %v620_v1 = vrot.slane %v1404_v23, %v70_v30  ;;  %v565_v24 = vsel %vm282_vm10, %v1404_v23, %v1369_v33  ;;  %v704_v3 = vrot.slane %v1404_v23, %v154_v31  ;;  %v659_v30 = vpop.permute.xlu1 %658 }
 0x2be   :  { %567 = vst [vmem:[#allocation2 + $0x8] sm:$0xf] %v565_v24 }
 0x2bf   :  { %v622_v25 = vmul.f32 %v620_v1, %v585_v42  ;;  %v624_v5 = vmul.f32 %v620_v1, %v595_v46  ;;  %v706_v6 = vmul.f32 %v704_v3, %v675_v22  ;;  %v626_v28 = vmul.f32 %v620_v1, %v605_v54 }
 0x2c0   :  { %v625_v29 = vmul.f32 %v620_v1, %v600_v50  ;;  %v621_v16 = vmul.f32 %v620_v1, %v580_v41  ;;  %v708_v38 = vmul.f32 %v704_v3, %v683_v26  ;;  %v627_v49 = vmul.f32 %v620_v1, %v610_v2 }
 0x2c1   :  { %v662_v7 = vadd.f32 %v635_v43, %v622_v25  ;;  %v664_v32 = vadd.f32 %v643_v47, %v624_v5  ;;  %v666_v34 = vadd.f32 %v651_v59, %v626_v28  ;;  %v628_v27 = vmul.f32 %v620_v1, %v615_v12  ;;  %v695_v54 = vpop.permute.xlu1 %694  ;;  %v699_v59 = vpop.permute.xlu0 %698 }
 0x2c2   :  { %v665_v52 = vadd.f32 %v647_v61, %v625_v29  ;;  %v661_v35 = vadd.f32 %v631_v51, %v621_v16  ;;  %v705_v42 = vmul.f32 %v704_v3, %v1392_v44  ;;  %v623_v43 = vmul.f32 %v620_v1, %v1394_v45 }
 0x2c3   :  { %v714_v37 = vadd.f32 %v706_v6, %v662_v7  ;;  %v716_v53 = vadd.f32 %v708_v38, %v664_v32  ;;  %v709_v46 = vmul.f32 %v704_v3, %v687_v8  ;;  %v710_v50 = vmul.f32 %v704_v3, %v691_v39 }
 0x2c4   :  { %v667_v47 = vadd.f32 %v655_v10, %v627_v49  ;;  %v713_v40 = vadd.f32 %v705_v42, %v661_v35  ;;  %v663_v41 = vadd.f32 %v639_v55, %v623_v43  ;;  %v707_v13 = vmul.f32 %v704_v3, %v1396_v48 }
 0x2c5   :  { %v730_v31 = vmul.f32 0.01, %v714_v37  ;;  %vm722_vm3 = vcmp.gt.f32.partialorder %v714_v37, 0.0  ;;  %v717_v15 = vadd.f32 %v709_v46, %v665_v52  ;;  %v732_v56 = vmul.f32 0.01, %v716_v53 }
 0x2c6   :  { %v668_v57 = vadd.f32 %v659_v30, %v628_v27  ;;  %v718_v58 = vadd.f32 %v710_v50, %v666_v34  ;;  %vm721_vm4 = vcmp.gt.f32.partialorder %v713_v40, 0.0  ;;  %v729_v51 = vmul.f32 0.01, %v713_v40 }
 0x2c7   :  { %v738_v61 = vsel %vm722_vm3, %v714_v37, %v730_v31  ;;  %v715_v44 = vadd.f32 %v707_v13, %v663_v41  ;;  %vm724_vm5 = vcmp.gt.f32.partialorder %v716_v53, 0.0  ;;  %v711_v45 = vmul.f32 %v704_v3, %v695_v54 }
 0x2c8   :  { %v712_v63 = vmul.f32 %v704_v3, %v699_v59  ;;  %v737_v0 = vsel %vm721_vm4, %v713_v40, %v729_v51  ;;  %v733_v4 = vmul.f32 0.01, %v717_v15  ;;  %v740_v9 = vsel %vm724_vm5, %v716_v53, %v732_v56  ;;  %v750_v3 = vpop.permute.xlu1 %749 }
 0x2c9   :  { %vm723_vm6 = vcmp.gt.f32.partialorder %v715_v44, 0.0  ;;  %v731_v18 = vmul.f32 0.01, %v715_v44  ;;  %v719_v8 = vadd.f32 %v711_v45, %v667_v47  ;;  %v1003_v55 = vpack.c.bf16 %v738_v61, %v737_v0 }
 0x2ca   :  { %v734_v48 = vmul.f32 0.01, %v718_v58  ;;  %v720_v10 = vadd.f32 %v712_v63, %v668_v57  ;;  %vm725_vm7 = vcmp.gt.f32.partialorder %v717_v15, 0.0  ;;  %vm726_vm8 = vcmp.gt.f32.partialorder %v718_v58, 0.0 }
 0x2cb   :  { %v739_v14 = vsel %vm723_vm6, %v715_v44, %v731_v18  ;;  %1004 = vmatpush3.bf16.msra.mxu0 %v1003_v55  ;;  %v741_v19 = vsel %vm725_vm7, %v717_v15, %v733_v4  ;;  %v735_v62 = vmul.f32 0.01, %v719_v8  ;;  %vm727_vm11 = vcmp.gt.f32.partialorder %v719_v8, 0.0 }
 0x2cc   :  { %1005 = vmatprep.subr.bf16.mxu0 %v1127_v11  ;;  %v1006_v17 = vpack.c.bf16 %v740_v9, %v739_v14  ;;  %v742_v60 = vsel %vm726_vm8, %v718_v58, %v734_v48  ;;  %v736_v20 = vmul.f32 0.01, %v720_v10  ;;  %vm728_vm12 = vcmp.gt.f32.partialorder %v720_v10, 0.0 }
 0x2cd   :  { %v1009_v2 = vpack.c.bf16 %v742_v60, %v741_v19  ;;  %v743_v22 = vsel %vm727_vm11, %v719_v8, %v735_v62 }
 0x2ce   :  { %v744_v1 = vsel %vm728_vm12, %v720_v10, %v736_v20 }
 0x2cf   :  { %1007 = vmatpush3.bf16.msra.mxu0 %v1006_v17  ;;  %v1012_v24 = vpack.c.bf16 %v744_v1, %v743_v22 }
 0x2d0   :  { %1008 = vmatprep.subr.bf16.mxu0 %v1127_v11 }
 0x2d3   :  { %1010 = vmatpush3.bf16.msra.mxu0 %v1009_v2 }
 0x2d4   :  { %1011 = vmatprep.subr.bf16.mxu0 %v1127_v11 }
 0x2d7   :  { %1013 = vmatpush3.bf16.msra.mxu0 %v1012_v24 }
 0x2da   :  { %976 = vmatmul.mubr.msk.f32.vlgmr.msra.gmra.mrb[2].mxu0 %vm202_vm9, %v1389_v36 }
 0x3ad   :  { %v820_v12 = vpop.f32.mrb[2].mxu0 }
 0x3ae   :  { %v821_v25 = vadd.f32 %v820_v12, %v750_v3  ;;  %v977_v26 = vpop.f32.mrb[3].mxu0 }
 0x3b0   :  { %v824_v5 = vmul.f32 1.442695, %v821_v25  ;;  %v831_v7 = vsel %vm282_vm10, %v821_v25, 0.0 }
 0x3b1   :  { %v832_v6 = vrot.slane %v831_v7, 4 }
 0x3b2   :  { %1074 = vpow2.f32 %v824_v5 }
 0x3b3   :  { %v833_v28 = vadd.f32 %v832_v6, %v831_v7 }
 0x3b5   :  { %v834_v29 = vrot.slane %v833_v28, 2 }
 0x3b7   :  { %v835_v32 = vadd.f32 %v834_v29, %v833_v28 }
 0x3b9   :  { %v836_v37 = vrot.slane %v835_v32, 1 }
 0x3bb   :  { %v837_v11 = vadd.f32 %v836_v37, %v835_v32 }
 0x3bc   :  { %v1075_v30 = vpop.eup %1074 }
 0x3bd   :  { %v827_v16 = vrot.slane %v1075_v30, 6  ;;  %v838_v36 = vadd.f32 %v837_v11, %v1402_v21 }
 0x3bf   :  { %v829_v38 = vmul.f32 %v827_v16, %v1369_v33  ;;  %842 = vst [vmem:[#allocation4] sm:$0x1] %v838_v36 }
 0x3c0   :  { %1087 = shalt.err (!%p1084_p4)
}
 0x3c1   :  { %s1088_s0 = scalar_lea.hbm %s1456_s4, 16 }
 0x3c2   :  { %p1089_p5 = scmp.ne.s32.totalorder %s1456_s4, %s1088_s0  ;;  %p1092_p6 = scmp.lt.u32.totalorder %s1088_s0, %s1456_s4 }
 0x3c4   :  { %p1094_p7 = pnand %p1092_p6, %p1089_p5 }
 0x3c6   :  { %1097 = shalt.err (!%p1094_p7)
}
 0x3c7   :  { %864 = dma.vmem_to_hbm [thread:$0]  %s862_s16, 16, %s1456_s4, [#allocation5]   ;;  %v830_v33 = vadd.f32 %v829_v38, %v821_v25 }
 0x3c8   :  { %s1098_s29 = scalar_lea.vmem %s849_s18, 256  ;;  %p1103_p9 = scmp.lt.s32.totalorder %s849_s18, %s849_s18 }
 0x3c9   :  { %v839_v21 = vsel %vm282_vm10, %v1404_v23, %v830_v33  ;;  %p1099_p8 = scmp.ne.s32.totalorder %s849_s18, %s1098_s29  ;;  %p1104_p10 = scmp.lt.s32.totalorder %s1098_s29, %s1098_s29 }
 0x3ca   :  { %841 = vst [vmem:[#allocation2 + $0xc] sm:$0xf] %v839_v21 }
 0x3cb   :  { %p1105_p11 = por %p1104_p10, %p1103_p9 }
 0x3cd   :  { %p1106_p12 = pnand %p1105_p11, %p1099_p8 }
 0x3cf   :  { %1109 = shalt.err (!%p1106_p12)
}
 0x3d0   :  { %s1110_s6 = scalar_lea.hbm %s1455_s3, 256 }
 0x3d1   :  { %p1111_p13 = scmp.ne.s32.totalorder %s1455_s3, %s1110_s6  ;;  %p1114_p0 = scmp.lt.u32.totalorder %s1110_s6, %s1455_s3 }
 0x3d3   :  { %p1116_p1 = pnand %p1114_p0, %p1111_p13 }
 0x3d5   :  { %1119 = shalt.err (!%p1116_p1)
}
 0x3d6   :  { %s1133_s10 = smov 64   ;;  %s1134_s11 = smov 4  }
 0x3d7   :  { %854 = dma.vmem_to_hbm [thread:$0]  %s849_s18, 256, %s1455_s3, [#allocation3], %s1133_s10, %s1133_s10, %s1134_s11  }
 0x3d8   :  { %1120 = dma.done.wait [#allocation3], 256  }
 0x3d9   :  { %1121 = vsyncadd [#allocation3], 4294967040 }
 0x3da   :  { %1122 = dma.done.wait [#allocation5], 16  }
 0x3db   :  { %1123 = vsyncadd [#allocation5], 4294967280 }
 0x3dc   :  { %871 = vsyncpa [#allocation3], 1 }
 0x3dd   :  { %872 = vsyncpa [#allocation5], 1 }

</bundles_post_ra>
